<compile_context>
chip_gen: v5e
topology: v5e:2x2
jax: 0.10.0
libtpu: 0.0.40
codegen_flags: <defaults>
</compile_context>

<pallas_src>
import functools

import jax
import jax.numpy as jnp
from jax.experimental import pallas as pl
from jax.experimental.pallas import tpu as pltpu

_LANE = 128                       # lane width: every trailing dim is a 128-multiple
_COMPUTE_DTYPE = jnp.bfloat16     # MXU operand dtype (accumulation stays f32)

_VMEM_LIMIT_CACHE = None


def _vmem_limit_bytes():
    """Scoped-VMEM budget: generous on 128-MiB chips, conservative fallback."""
    global _VMEM_LIMIT_CACHE
    if _VMEM_LIMIT_CACHE is None:
        default = 32 * 1024 * 1024
        try:
            cap = int(pltpu.get_tpu_info().vmem_capacity_bytes)
            _VMEM_LIMIT_CACHE = max(default, min((cap * 3) // 4, 96 * 1024 * 1024))
        except Exception:  # pragma: no cover - info query unavailable
            _VMEM_LIMIT_CACHE = default
    return _VMEM_LIMIT_CACHE


def _pad_to(v, m):
    return ((v + m - 1) // m) * m


def _pad2d(x, rows, cols, dtype):
    """Zero-pad a 2-D array to (rows, cols) and cast to dtype."""
    out = jnp.zeros((rows, cols), dtype)
    return out.at[: x.shape[0], : x.shape[1]].set(x.astype(dtype))


def _largest_tile(n_pad, cap):
    """Largest multiple of 128 that divides n_pad, at most cap."""
    best, t = 128, 128
    top = min(cap, n_pad)
    while t <= top:
        if n_pad % t == 0:
            best = t
        t += 128
    return best


def _choose_pad(n128):
    """Allow up to ~12.5% extra node padding if it buys a larger divisor tile."""
    best_pad, best_tile = n128, _largest_tile(n128, 1024)
    cand = n128 + 128
    budget = n128 + max(n128 // 8, 128)
    while best_tile < 1024 and cand <= budget:
        t = _largest_tile(cand, 1024)
        if t > best_tile:
            best_pad, best_tile = cand, t
        cand += 128
    return best_pad


def _node_tiling(n):
    """Padded node count and (row tile TM, reduction tile TK) for aggregation."""
    n128 = _pad_to(max(n, 1), _LANE)
    if n128 <= 512:
        return n128, n128, n128           # fused single-tile path
    n_pad = _choose_pad(n128)
    tm_cap = 2048 if n_pad >= 4096 else 1024
    tm = _largest_tile(n_pad, tm_cap)
    tk = _largest_tile(n_pad, 1024)
    return n_pad, tm, tk


# ----------------------------------------------------------------------------
# Fused small-graph layer: relu?(A_hat @ (X @ W) + b) in one pallas_call
# ----------------------------------------------------------------------------
def _fused_layer_kernel(a_ref, x_ref, w_ref, b_ref, o_ref, *, apply_relu):
    h = jnp.dot(x_ref[...], w_ref[...], preferred_element_type=jnp.float32)
    out = jnp.dot(a_ref[...], h.astype(a_ref.dtype),
                  preferred_element_type=jnp.float32)
    out = out + b_ref[...]
    if apply_relu:
        out = jnp.maximum(out, 0.0)
    o_ref[...] = out.astype(o_ref.dtype)


def _fused_layer(a_p, x_p, w_p, b_p, *, apply_relu, out_dtype):
    n_pad, f_in_p = x_p.shape
    f_out_p = w_p.shape[1]
    cost = pl.CostEstimate(
        flops=2 * n_pad * f_in_p * f_out_p + 2 * n_pad * n_pad * f_out_p,
        transcendentals=0,
        bytes_accessed=(a_p.size * a_p.dtype.itemsize
                        + x_p.size * x_p.dtype.itemsize
                        + w_p.size * w_p.dtype.itemsize
                        + b_p.size * b_p.dtype.itemsize
                        + n_pad * f_out_p * jnp.dtype(out_dtype).itemsize),
    )
    kernel = functools.partial(_fused_layer_kernel, apply_relu=apply_relu)
    return pl.pallas_call(
        kernel,
        out_shape=jax.ShapeDtypeStruct((n_pad, f_out_p), out_dtype),
        compiler_params=pltpu.CompilerParams(vmem_limit_bytes=_vmem_limit_bytes()),
        cost_estimate=cost,
    )(a_p, x_p, w_p, b_p)


# ----------------------------------------------------------------------------
# Stage 1 (large graphs): feature transform  H = X @ W   (row-tiled streaming)
# ----------------------------------------------------------------------------
def _xw_kernel(x_ref, w_ref, o_ref):
    o_ref[...] = jnp.dot(
        x_ref[...], w_ref[...], preferred_element_type=jnp.float32
    ).astype(o_ref.dtype)


def _feature_transform(x_p, w_p, tm):
    n_pad, f_in_p = x_p.shape
    f_out_p = w_p.shape[1]
    cost = pl.CostEstimate(
        flops=2 * n_pad * f_in_p * f_out_p,
        transcendentals=0,
        bytes_accessed=(x_p.size * x_p.dtype.itemsize
                        + w_p.size * w_p.dtype.itemsize
                        + n_pad * f_out_p * 2),
    )
    return pl.pallas_call(
        _xw_kernel,
        out_shape=jax.ShapeDtypeStruct((n_pad, f_out_p), _COMPUTE_DTYPE),
        grid_spec=pltpu.PrefetchScalarGridSpec(
            num_scalar_prefetch=0,
            grid=(n_pad // tm,),
            in_specs=[
                pl.BlockSpec((tm, f_in_p), lambda i: (i, 0)),       # X row tile
                pl.BlockSpec((f_in_p, f_out_p), lambda i: (0, 0)),  # W (resident)
            ],
            out_specs=pl.BlockSpec((tm, f_out_p), lambda i: (i, 0)),
        ),
        compiler_params=pltpu.CompilerParams(
            dimension_semantics=("parallel",),
            vmem_limit_bytes=_vmem_limit_bytes(),
        ),
        cost_estimate=cost,
    )(x_p, w_p)


# ----------------------------------------------------------------------------
# Stage 2 (large graphs): aggregation  out = relu?(A_hat @ H + b)
#   grid = (row tiles, reduction tiles); f32 VMEM accumulator; optional
#   VMEM-resident H (fetched once, sliced in-kernel) to kill H re-streaming.
# ----------------------------------------------------------------------------
def _agg_kernel(a_ref, h_ref, b_ref, o_ref, acc_ref, *, apply_relu, tk, h_resident):
    k = pl.program_id(1)
    if h_resident:
        start = pl.multiple_of(k * tk, tk)
        h_tile = h_ref[pl.ds(start, tk), :]
    else:
        h_tile = h_ref[...]
    part = jnp.dot(a_ref[...], h_tile, preferred_element_type=jnp.float32)

    @pl.when(k == 0)
    def _():
        acc_ref[...] = part                      # direct write: no zero-init + RMW

    @pl.when(k != 0)
    def _():
        acc_ref[...] += part

    @pl.when(k == pl.num_programs(1) - 1)
    def _():
        out = acc_ref[...] + b_ref[...]
        if apply_relu:
            out = jnp.maximum(out, 0.0)
        o_ref[...] = out.astype(o_ref.dtype)


def _aggregate(a_p, h_p, b_p, *, tm, tk, apply_relu, out_dtype):
    n_pad = a_p.shape[0]
    f_out_p = h_p.shape[1]
    h_bytes = h_p.size * h_p.dtype.itemsize
    # Keep H fully VMEM-resident across row tiles when it comfortably fits
    # (counting potential double buffering) inside the scoped-VMEM budget.
    h_resident = (2 * h_bytes) <= (_vmem_limit_bytes() // 3)

    n_row_tiles = n_pad // tm
    h_reads = 1 if h_resident else n_row_tiles
    cost = pl.CostEstimate(
        flops=2 * n_pad * n_pad * f_out_p,
        transcendentals=0,
        bytes_accessed=(a_p.size * a_p.dtype.itemsize
                        + h_reads * h_bytes
                        + b_p.size * b_p.dtype.itemsize
                        + n_pad * f_out_p * jnp.dtype(out_dtype).itemsize),
    )

    if h_resident:
        h_spec = pl.BlockSpec((n_pad, f_out_p), lambda i, k: (0, 0))  # fetched once
    else:
        h_spec = pl.BlockSpec((tk, f_out_p), lambda i, k: (k, 0))

    kernel = functools.partial(
        _agg_kernel, apply_relu=apply_relu, tk=tk, h_resident=h_resident)
    return pl.pallas_call(
        kernel,
        out_shape=jax.ShapeDtypeStruct((n_pad, f_out_p), out_dtype),
        grid_spec=pltpu.PrefetchScalarGridSpec(
            num_scalar_prefetch=0,
            grid=(n_pad // tm, n_pad // tk),
            in_specs=[
                pl.BlockSpec((tm, tk), lambda i, k: (i, k)),      # A_hat tile
                h_spec,                                           # XW (tile or resident)
                pl.BlockSpec((1, f_out_p), lambda i, k: (0, 0)),  # bias (f32)
            ],
            out_specs=pl.BlockSpec((tm, f_out_p), lambda i, k: (i, 0)),
            scratch_shapes=[pltpu.VMEM((tm, f_out_p), jnp.float32)],
        ),
        compiler_params=pltpu.CompilerParams(
            dimension_semantics=("parallel", "arbitrary"),
            vmem_limit_bytes=_vmem_limit_bytes(),
        ),
        cost_estimate=cost,
    )(a_p, h_p, b_p)


# ----------------------------------------------------------------------------
# One GCNConv layer on padded operands
# ----------------------------------------------------------------------------
def gcn_layer(a_p, x_p, w, b, *, fused, tm, tk, apply_relu,
              out_dtype=_COMPUTE_DTYPE):
    n_pad, f_in_p = x_p.shape
    f_in, f_out = w.shape
    assert f_in_p >= f_in
    f_out_p = _pad_to(f_out, _LANE)
    w_p = _pad2d(w, f_in_p, f_out_p, _COMPUTE_DTYPE)
    b_p = _pad2d(b.reshape(1, -1), 1, f_out_p, jnp.float32)

    if fused:
        return _fused_layer(a_p, x_p, w_p, b_p,
                            apply_relu=apply_relu, out_dtype=out_dtype)

    # Stage-1 row tile is decoupled from the aggregation tile (streaming kernel).
    tm1 = _largest_tile(n_pad, 1024)
    h_p = _feature_transform(x_p, w_p, tm1)
    return _aggregate(a_p, h_p, b_p, tm=tm, tk=tk,
                      apply_relu=apply_relu, out_dtype=out_dtype)


# ----------------------------------------------------------------------------
# Plain-JAX glue: normalized adjacency (built at padded size), init, forward
# ----------------------------------------------------------------------------
def build_norm_adj_padded(edge_index, num_nodes, n_pad, edge_weight=None,
                          out_dtype=_COMPUTE_DTYPE):
    """Dense D^{-1/2}(A + I)D^{-1/2}, built once at padded size, cast once.

    Matches PyG gcn_norm: self-loops (weight 1) are only added to nodes that do
    not already have one; padded rows/cols stay exactly zero.
    """
    # TODO(synk): for large/sparse graphs replace the dense A_hat with
    # block-sparse tiles driven by scalar-prefetch metadata; dense build is O(N^2).
    src = edge_index[0].astype(jnp.int32)
    dst = edge_index[1].astype(jnp.int32)
    if edge_weight is None:
        ew = jnp.ones(src.shape[0], jnp.float32)
    else:
        ew = edge_weight.astype(jnp.float32)
    a = jnp.zeros((n_pad, n_pad), jnp.float32)
    a = a.at[dst, src].add(ew)                       # A[dst, src] = weight
    diag = jnp.arange(num_nodes, dtype=jnp.int32)
    cur = a[diag, diag]
    a = a.at[diag, diag].set(jnp.where(cur > 0, cur, 1.0))   # remaining self-loops
    deg = a.sum(axis=1)
    dinv = jnp.where(deg > 0, jax.lax.rsqrt(deg), 0.0)
    return (dinv[:, None] * a * dinv[None, :]).astype(out_dtype)


def init_gcn_params(key, input_dim, hidden_dim, output_dim, num_layers=2):
    """Deterministic glorot-style init for the GCNConv stack (bias = 0)."""
    dims = [input_dim] + [hidden_dim] * (num_layers - 1) + [output_dim]
    params = []
    for f_in, f_out in zip(dims[:-1], dims[1:]):
        key, sub = jax.random.split(key)
        scale = jnp.sqrt(6.0 / (f_in + f_out))
        w = jax.random.uniform(sub, (f_in, f_out), jnp.float32, -scale, scale)
        b = jnp.zeros((f_out,), jnp.float32)
        params.append((w, b))
    return params


def gcn_forward(params, x, edge_index, edge_weight=None):
    n, f_in = x.shape
    n_pad, tm, tk = _node_tiling(n)
    fused = n_pad <= 512

    a_p = build_norm_adj_padded(edge_index, n, n_pad, edge_weight,
                                out_dtype=_COMPUTE_DTYPE)
    f_in_p = _pad_to(f_in, _LANE)
    h = _pad2d(x, n_pad, f_in_p, _COMPUTE_DTYPE)

    # Hidden layers: conv -> ReLU -> dropout (eval mode: dropout is identity).
    for w, b in params[:-1]:
        h = gcn_layer(a_p, h, w, b, fused=fused, tm=tm, tk=tk, apply_relu=True)
        # TODO(synk): training-mode F.dropout not implemented (inference path only).
    w, b = params[-1]
    out_p = gcn_layer(a_p, h, w, b, fused=fused, tm=tm, tk=tk,
                      apply_relu=False, out_dtype=jnp.float32)
    return out_p[:n, : w.shape[1]]


def gcn_reference(params, x, edge_index, edge_weight=None):
    """Pure-JAX f32 reference for sanity checking."""
    n = x.shape[0]
    a_hat = build_norm_adj_padded(edge_index, n, n, edge_weight,
                                  out_dtype=jnp.float32)
    h = x
    for w, b in params[:-1]:
        h = jnp.maximum(a_hat @ (h @ w) + b, 0.0)
    w, b = params[-1]
    return a_hat @ (h @ w) + b


if __name__ == "__main__":
    key = jax.random.PRNGKey(0)
    k_x, k_p = jax.random.split(key)

    N, F_IN, HIDDEN, OUT, NUM_LAYERS = 16, 16, 32, 4, 2

    # Node features [N, F_IN].
    x = jax.random.normal(k_x, (N, F_IN), jnp.float32)

    # Small deterministic undirected graph: ring over N nodes (both directions).
    src = jnp.arange(N, dtype=jnp.int32)
    dst = (src + 1) % N
    edge_index = jnp.stack(
        [jnp.concatenate([src, dst]), jnp.concatenate([dst, src])], axis=0
    )

    params = init_gcn_params(k_p, F_IN, HIDDEN, OUT, num_layers=NUM_LAYERS)

    out = gcn_forward(params, x, edge_index)
    jax.block_until_ready(out)

    assert out.shape == (N, OUT)
    assert bool(jnp.all(jnp.isfinite(out)))

    # Loose tolerance: kernel uses bf16 MXU operands with f32 accumulation.
    ref = gcn_reference(params, x, edge_index)
    max_err = float(jnp.max(jnp.abs(out - ref)))
    assert max_err < 0.5, f"max abs error {max_err}"

    print("KERNEL_OK")
</pallas_src>

<mosaic_0001>
module attributes {stable_mosaic.version = 11 : i64} {
  func.func @_fused_layer_kernel(%arg0: memref<128x128xbf16, #tpu.memory_space<vmem>>, %arg1: memref<128x128xbf16, #tpu.memory_space<vmem>>, %arg2: memref<128x128xbf16, #tpu.memory_space<vmem>>, %arg3: memref<1x128xf32, #tpu.memory_space<vmem>>, %arg4: memref<128x128xbf16, #tpu.memory_space<vmem>>) attributes {dimension_semantics = [], scalar_prefetch = 0 : i64, scratch_operands = 0 : i64, tpu.core_type = #tpu.core_type<tc>} {
    %c0 = arith.constant 0 : index
    %c0_0 = arith.constant 0 : index
    %0 = vector.load %arg1[%c0, %c0_0] : memref<128x128xbf16, #tpu.memory_space<vmem>>, vector<128x128xbf16>
    %c0_1 = arith.constant 0 : index
    %c0_2 = arith.constant 0 : index
    %1 = vector.load %arg2[%c0_1, %c0_2] : memref<128x128xbf16, #tpu.memory_space<vmem>>, vector<128x128xbf16>
    %cst = arith.constant dense<0.000000e+00> : vector<128x128xf32>
    %2 = tpu.matmul %0, %1, %cst {dimension_numbers = #tpu.dot_dimension_numbers<[1], [0], [0], [1], [0, 0, 1, 1], [], []>} : vector<128x128xbf16>, vector<128x128xbf16>, vector<128x128xf32> -> vector<128x128xf32>
    %c0_3 = arith.constant 0 : index
    %c0_4 = arith.constant 0 : index
    %3 = vector.load %arg0[%c0_3, %c0_4] : memref<128x128xbf16, #tpu.memory_space<vmem>>, vector<128x128xbf16>
    %4 = arith.truncf %2 : vector<128x128xf32> to vector<128x128xbf16>
    %cst_5 = arith.constant dense<0.000000e+00> : vector<128x128xf32>
    %5 = tpu.matmul %3, %4, %cst_5 {dimension_numbers = #tpu.dot_dimension_numbers<[1], [0], [0], [1], [0, 0, 1, 1], [], []>} : vector<128x128xbf16>, vector<128x128xbf16>, vector<128x128xf32> -> vector<128x128xf32>
    %c0_6 = arith.constant 0 : index
    %c0_7 = arith.constant 0 : index
    %6 = vector.load %arg3[%c0_6, %c0_7] : memref<1x128xf32, #tpu.memory_space<vmem>>, vector<1x128xf32>
    %7 = vector.broadcast %6 : vector<1x128xf32> to vector<128x128xf32>
    %8 = arith.addf %5, %7 : vector<128x128xf32>
    %cst_8 = arith.constant 0.000000e+00 : f32
    %9 = vector.broadcast %cst_8 : f32 to vector<128x128xf32>
    %10 = arith.maximumf %8, %9 : vector<128x128xf32>
    %11 = arith.truncf %10 : vector<128x128xf32> to vector<128x128xbf16>
    %c0_9 = arith.constant 0 : index
    %c0_10 = arith.constant 0 : index
    %12 = vector.load %arg4[%c0_9, %c0_10] : memref<128x128xbf16, #tpu.memory_space<vmem>>, vector<128x128xbf16>
    tpu.vector_store %arg4[%c0_9, %c0_10], %11 {strides = array<i32>} : memref<128x128xbf16, #tpu.memory_space<vmem>>, vector<128x128xbf16>,
    return
  }
}

</mosaic_0001>

<bundles_post_ra>
// kernel: tpu_custom_call.1
= control target key start
LH: loop header
LB: loop body
LE: loop exit
PB: predicated region body
PF: predicated region fallthrough
CT: control target
= control target key end

     0   :  { %9 = vsyncpa [#allocation3], 0  ;;  %s785_s0 = inlined_call_operand.hbm [shape: bf16[128,128], index: 0, kind: input, shape index: {}]   ;;  %s786_s1 = inlined_call_operand.hbm [shape: bf16[128,128], index: 1, kind: input, shape index: {}]   ;;  %s787_s2 = inlined_call_operand.hbm [shape: bf16[128,128], index: 2, kind: input, shape index: {}]   ;;  %s788_s3 = inlined_call_operand.vmem [shape: f32[1,128], index: 3, kind: input, shape index: {}]   ;;  %s789_s4 = inlined_call_operand.hbm [shape: bf16[128,128], index: 4, kind: output, shape index: {}]  }
   0x1   :  { %10 = vsyncpa [#allocation6], 0 }
   0x2   :  { %11 = vsyncpa [#allocation4], 0  ;;  %s29_s17 = sshll.u32 %s786_s1, 4  ;;  %s727_s18 = smov [#allocation5]   ;;  %s30_s17 = int_to_ptr.hbm [resolvable:$true] %s29_s17 }
   0x3   :  { %s31_s19 = sshll.u32 %s727_s18, 4  ;;  %s16_s22 = sshll.u32 %s785_s0, 4  ;;  %s32_s19 = int_to_ptr.vmem [resolvable:$true] %s31_s19  ;;  %s17_s22 = int_to_ptr.hbm [resolvable:$true] %s16_s22 }
   0x4   :  { %s728_s23 = smov 64   ;;  %s729_s24 = smov 4  }
   0x5   :  { %37 = dma.hbm_to_vmem [thread:$0]  %s30_s17, 1024, %s32_s19, [#allocation6], %s728_s23, %s728_s23, %s729_s24  }
   0x6   :  { %s730_s25 = smov [#allocation2]   ;;  %s42_s1 = sshll.u32 %s787_s2, 4  ;;  %s43_s1 = int_to_ptr.hbm [resolvable:$true] %s42_s1 }
   0x7   :  { %s18_s26 = sshll.u32 %s730_s25, 4  ;;  %s731_s0 = smov [#allocation7]   ;;  %s19_s26 = int_to_ptr.vmem [resolvable:$true] %s18_s26 }
   0x8   :  { %24 = dma.hbm_to_vmem [thread:$0]  %s17_s22, 1024, %s19_s26, [#allocation3], %s728_s23, %s728_s23, %s729_s24  }
   0x9   :  { %s44_s29 = sshll.u32 %s731_s0, 4  ;;  %s45_s29 = int_to_ptr.vmem [resolvable:$true] %s44_s29 }
   0xa   :  { %50 = dma.hbm_to_vmem [thread:$0]  %s43_s1, 1024, %s45_s29, [#allocation6], %s728_s23, %s728_s23, %s729_s24  }
   0xb   :  { %721 = dma.done.wait [#allocation3], 1024  }
   0xc   :  { %722 = vsyncadd [#allocation3], 4294966272 }
   0xd   :  { %723 = dma.done.wait [#allocation6], 2048  }
   0xe   :  { %724 = vsyncadd [#allocation6], 4294965248  ;;  %v546_v0 = vld [vmem:[#allocation7 + $0x38] sm:$0xff]  ;;  %v545_v1 = vld [vmem:[#allocation7 + $0x30] sm:$0xff]  ;;  %s421_s8 = sshll.u32 %s789_s4, 4  ;;  %s422_s8 = int_to_ptr.hbm [resolvable:$true] %s421_s8 }
   0xf   :  { %602 = vmatpush.bf16.msra.mxu2 %v546_v0  ;;  %193 = vmatpush.bf16.msra.mxu0 %v546_v0  ;;  %v544_v2 = vld [vmem:[#allocation7 + $0x28] sm:$0xff]  ;;  %v543_v3 = vld [vmem:[#allocation7 + $0x20] sm:$0xff]  ;;  %v542_v4 = vld [vmem:[#allocation7 + $0x18] sm:$0xff] }
  0x10   :  { %v541_v5 = vld [vmem:[#allocation7 + $0x10] sm:$0xff]  ;;  %v540_v6 = vld [vmem:[#allocation7 + $0x8] sm:$0xff]  ;;  %v539_v7 = vld [vmem:[#allocation7] sm:$0xff] }
  0x11   :  { %v535_v8 = vld [vmem:[#allocation5 + $0x20] sm:$0xff]  ;;  %v536_v10 = vld [vmem:[#allocation5 + $0x28] sm:$0xff]  ;;  %v537_v12 = vld [vmem:[#allocation5 + $0x30] sm:$0xff] }
  0x12   :  { %v531_v9 = vld [vmem:[#allocation5] sm:$0xff]  ;;  %v532_v11 = vld [vmem:[#allocation5 + $0x8] sm:$0xff]  ;;  %v533_v13 = vld [vmem:[#allocation5 + $0x10] sm:$0xff] }
  0x13   :  { %603 = vmatpush.bf16.msra.mxu2 %v545_v1  ;;  %194 = vmatpush.bf16.msra.mxu0 %v545_v1  ;;  %v538_v14 = vld [vmem:[#allocation5 + $0x38] sm:$0xff]  ;;  %v547_v40 = vld [vmem:[#allocation2] sm:$0xff]  ;;  %v548_v42 = vld [vmem:[#allocation2 + $0x8] sm:$0xff] }
  0x14   :  { %v534_v15 = vld [vmem:[#allocation5 + $0x18] sm:$0xff]  ;;  %v551_v41 = vld [vmem:[#allocation2 + $0x20] sm:$0xff]  ;;  %v552_v43 = vld [vmem:[#allocation2 + $0x28] sm:$0xff] }
  0x15   :  { %v549_v44 = vld [vmem:[#allocation2 + $0x10] sm:$0xff]  ;;  %v550_v46 = vld [vmem:[#allocation2 + $0x18] sm:$0xff]  ;;  %v624_v49 = vld [vmem:[%s788_s3] ss:$0 sm:$0xff]  ;;  %s732_s3 = smov [#allocation8]  }
  0x16   :  { %v553_v45 = vld [vmem:[#allocation2 + $0x30] sm:$0xff]  ;;  %v554_v47 = vld [vmem:[#allocation2 + $0x38] sm:$0xff]  ;;  %s419_s5 = sshll.u32 %s732_s3, 4  ;;  %s420_s5 = int_to_ptr.vmem [resolvable:$true] %s419_s5 }
  0x17   :  { %604 = vmatpush.bf16.msra.mxu2 %v544_v2  ;;  %195 = vmatpush.bf16.msra.mxu0 %v544_v2 }
  0x1b   :  { %605 = vmatpush.bf16.msra.mxu2 %v543_v3  ;;  %196 = vmatpush.bf16.msra.mxu0 %v543_v3 }
  0x1f   :  { %606 = vmatpush.bf16.msra.mxu2 %v542_v4  ;;  %197 = vmatpush.bf16.msra.mxu0 %v542_v4 }
  0x23   :  { %607 = vmatpush.bf16.msra.mxu2 %v541_v5  ;;  %198 = vmatpush.bf16.msra.mxu0 %v541_v5 }
  0x27   :  { %608 = vmatpush.bf16.msra.mxu2 %v540_v6  ;;  %199 = vmatpush.bf16.msra.mxu0 %v540_v6 }
  0x2b   :  { %609 = vmatpush.bf16.msra.mxu2 %v539_v7  ;;  %200 = vmatpush.bf16.msra.mxu0 %v539_v7 }
  0x2e   :  { %221 = vmatmul.bf16.vlgmr.msra.gmra.mxu2 %v535_v8  ;;  %201 = vmatmul.bf16.vlgmr.msra.gmra.mxu0 %v531_v9 }
  0x3e   :  { %226 = vmatmul.bf16.gmra.mxu2 %v536_v10  ;;  %206 = vmatmul.bf16.gmra.mxu0 %v532_v11 }
  0x4e   :  { %231 = vmatmul.bf16.gmra.mxu2 %v537_v12  ;;  %211 = vmatmul.bf16.gmra.mxu0 %v533_v13 }
  0x5e   :  { %236 = vmatmul.bf16.gmra.mxu2 %v538_v14  ;;  %216 = vmatmul.bf16.gmra.mxu0 %v534_v15 }
  0xab   :  { %v202_v17 = vpop.f32.mrf.mxu0 }
  0xb1   :  { %v222_v16 = vpop.f32.mrf.mxu2 }
  0xb3   :  { %v204_v19 = vpop.f32.mrf.mxu0 }
  0xb4   :  { %v258_v39 = vpack.c.bf16 %v204_v19, %v202_v17 }
  0xb9   :  { %v224_v18 = vpop.f32.mrf.mxu2 }
  0xba   :  { %v262_v34 = vpack.c.bf16 %v224_v18, %v222_v16 }
  0xbb   :  { %v207_v21 = vpop.f32.mrf.mxu0 }
  0xc1   :  { %v227_v20 = vpop.f32.mrf.mxu2 }
  0xc3   :  { %v209_v23 = vpop.f32.mrf.mxu0 }
  0xc4   :  { %v259_v38 = vpack.c.bf16 %v209_v23, %v207_v21 }
  0xc9   :  { %v229_v22 = vpop.f32.mrf.mxu2 }
  0xca   :  { %v263_v33 = vpack.c.bf16 %v229_v22, %v227_v20 }
  0xcb   :  { %v212_v25 = vpop.f32.mrf.mxu0 }
  0xd1   :  { %v232_v24 = vpop.f32.mrf.mxu2 }
  0xd3   :  { %v214_v28 = vpop.f32.mrf.mxu0 }
  0xd4   :  { %v260_v37 = vpack.c.bf16 %v214_v28, %v212_v25 }
  0xd9   :  { %v234_v26 = vpop.f32.mrf.mxu2 }
  0xda   :  { %v264_v32 = vpack.c.bf16 %v234_v26, %v232_v24 }
  0xdb   :  { %v217_v31 = vpop.f32.mrf.mxu0 }
  0xe1   :  { %v237_v27 = vpop.f32.mrf.mxu2 }
  0xe3   :  { %v219_v35 = vpop.f32.mrf.mxu0 }
  0xe4   :  { %v261_v36 = vpack.c.bf16 %v219_v35, %v217_v31 }
  0xe9   :  { %v239_v29 = vpop.f32.mrf.mxu2 }
  0xea   :  { %v265_v30 = vpack.c.bf16 %v239_v29, %v237_v27 }
  0xec   :  { %318 = vmatpush.bf16.msra.mxu1 %v265_v30  ;;  %610 = vmatpush.bf16.msra.mxu3 %v265_v30 }
  0xf0   :  { %319 = vmatpush.bf16.msra.mxu1 %v264_v32  ;;  %611 = vmatpush.bf16.msra.mxu3 %v264_v32 }
  0xf4   :  { %320 = vmatpush.bf16.msra.mxu1 %v263_v33  ;;  %612 = vmatpush.bf16.msra.mxu3 %v263_v33 }
  0xf8   :  { %321 = vmatpush.bf16.msra.mxu1 %v262_v34  ;;  %613 = vmatpush.bf16.msra.mxu3 %v262_v34 }
  0xfc   :  { %322 = vmatpush.bf16.msra.mxu1 %v261_v36  ;;  %614 = vmatpush.bf16.msra.mxu3 %v261_v36 }
 0x100   :  { %323 = vmatpush.bf16.msra.mxu1 %v260_v37  ;;  %615 = vmatpush.bf16.msra.mxu3 %v260_v37 }
 0x104   :  { %324 = vmatpush.bf16.msra.mxu1 %v259_v38  ;;  %616 = vmatpush.bf16.msra.mxu3 %v259_v38 }
 0x108   :  { %325 = vmatpush.bf16.msra.mxu1 %v258_v39  ;;  %617 = vmatpush.bf16.msra.mxu3 %v258_v39 }
 0x10b   :  { %326 = vmatmul.bf16.vlgmr.msra.gmra.mxu1 %v547_v40  ;;  %346 = vmatmul.bf16.vlgmr.msra.gmra.mxu3 %v551_v41 }
 0x11b   :  { %331 = vmatmul.bf16.gmra.mxu1 %v548_v42  ;;  %351 = vmatmul.bf16.gmra.mxu3 %v552_v43 }
 0x12b   :  { %336 = vmatmul.bf16.gmra.mxu1 %v549_v44  ;;  %356 = vmatmul.bf16.gmra.mxu3 %v553_v45 }
 0x13b   :  { %341 = vmatmul.bf16.gmra.mxu1 %v550_v46  ;;  %361 = vmatmul.bf16.gmra.mxu3 %v554_v47 }
 0x188   :  { %v327_v48 = vpop.f32.mrf.mxu1 }
 0x189   :  { %v328_v51 = vadd.f32 %v624_v49, %v327_v48 }
 0x18b   :  { %v367_v54 = vmax.f32 %v328_v51, 0.0 }
 0x18e   :  { %v347_v50 = vpop.f32.mrf.mxu3 }
 0x18f   :  { %v348_v56 = vadd.f32 %v624_v49, %v347_v50 }
 0x190   :  { %v329_v52 = vpop.f32.mrf.mxu1 }
 0x191   :  { %v330_v53 = vadd.f32 %v624_v49, %v329_v52  ;;  %v375_v61 = vmax.f32 %v348_v56, 0.0 }
 0x193   :  { %v368_v55 = vmax.f32 %v330_v53, 0.0 }
 0x195   :  { %v558_v57 = vpack.c.bf16 %v368_v55, %v367_v54 }
 0x196   :  { %v349_v58 = vpop.f32.mrf.mxu3 }
 0x197   :  { %559 = vst [vmem:[#allocation8] sm:$0xff] %v558_v57   ;;  %v350_v59 = vadd.f32 %v624_v49, %v349_v58 }
 0x198   :  { %v332_v60 = vpop.f32.mrf.mxu1 }
 0x199   :  { %v376_v62 = vmax.f32 %v350_v59, 0.0  ;;  %v333_v1 = vadd.f32 %v624_v49, %v332_v60 }
 0x19b   :  { %v578_v63 = vpack.c.bf16 %v376_v62, %v375_v61  ;;  %v369_v4 = vmax.f32 %v333_v1, 0.0 }
 0x19d   :  { %598 = vst [vmem:[#allocation8 + $0x20] sm:$0xff] %v578_v63  }
 0x19e   :  { %v352_v0 = vpop.f32.mrf.mxu3 }
 0x19f   :  { %v353_v6 = vadd.f32 %v624_v49, %v352_v0 }
 0x1a0   :  { %v334_v2 = vpop.f32.mrf.mxu1 }
 0x1a1   :  { %v335_v3 = vadd.f32 %v624_v49, %v334_v2  ;;  %v377_v11 = vmax.f32 %v353_v6, 0.0 }
 0x1a3   :  { %v370_v5 = vmax.f32 %v335_v3, 0.0 }
 0x1a5   :  { %v563_v7 = vpack.c.bf16 %v370_v5, %v369_v4 }
 0x1a6   :  { %v354_v8 = vpop.f32.mrf.mxu3 }
 0x1a7   :  { %595 = vst [vmem:[#allocation8 + $0x8] sm:$0xff] %v563_v7   ;;  %v355_v9 = vadd.f32 %v624_v49, %v354_v8 }
 0x1a8   :  { %v337_v10 = vpop.f32.mrf.mxu1 }
 0x1a9   :  { %v378_v12 = vmax.f32 %v355_v9, 0.0  ;;  %v338_v15 = vadd.f32 %v624_v49, %v337_v10 }
 0x1ab   :  { %v583_v13 = vpack.c.bf16 %v378_v12, %v377_v11  ;;  %v371_v18 = vmax.f32 %v338_v15, 0.0 }
 0x1ad   :  { %599 = vst [vmem:[#allocation8 + $0x28] sm:$0xff] %v583_v13  }
 0x1ae   :  { %v357_v14 = vpop.f32.mrf.mxu3 }
 0x1af   :  { %v358_v20 = vadd.f32 %v624_v49, %v357_v14 }
 0x1b0   :  { %v339_v16 = vpop.f32.mrf.mxu1 }
 0x1b1   :  { %v340_v17 = vadd.f32 %v624_v49, %v339_v16  ;;  %v379_v25 = vmax.f32 %v358_v20, 0.0 }
 0x1b3   :  { %v372_v19 = vmax.f32 %v340_v17, 0.0 }
 0x1b5   :  { %v568_v21 = vpack.c.bf16 %v372_v19, %v371_v18 }
 0x1b6   :  { %v359_v22 = vpop.f32.mrf.mxu3 }
 0x1b7   :  { %596 = vst [vmem:[#allocation8 + $0x10] sm:$0xff] %v568_v21   ;;  %v360_v23 = vadd.f32 %v624_v49, %v359_v22 }
 0x1b8   :  { %v342_v24 = vpop.f32.mrf.mxu1 }
 0x1b9   :  { %v380_v26 = vmax.f32 %v360_v23, 0.0  ;;  %v343_v29 = vadd.f32 %v624_v49, %v342_v24 }
 0x1bb   :  { %v588_v27 = vpack.c.bf16 %v380_v26, %v379_v25  ;;  %v373_v32 = vmax.f32 %v343_v29, 0.0 }
 0x1bd   :  { %600 = vst [vmem:[#allocation8 + $0x30] sm:$0xff] %v588_v27  }
 0x1be   :  { %v362_v28 = vpop.f32.mrf.mxu3 }
 0x1bf   :  { %v363_v34 = vadd.f32 %v624_v49, %v362_v28 }
 0x1c0   :  { %v344_v30 = vpop.f32.mrf.mxu1 }
 0x1c1   :  { %v345_v31 = vadd.f32 %v624_v49, %v344_v30  ;;  %v381_v38 = vmax.f32 %v363_v34, 0.0 }
 0x1c3   :  { %v374_v33 = vmax.f32 %v345_v31, 0.0 }
 0x1c5   :  { %v573_v35 = vpack.c.bf16 %v374_v33, %v373_v32 }
 0x1c6   :  { %v364_v36 = vpop.f32.mrf.mxu3 }
 0x1c7   :  { %597 = vst [vmem:[#allocation8 + $0x18] sm:$0xff] %v573_v35   ;;  %v365_v37 = vadd.f32 %v624_v49, %v364_v36 }
 0x1c9   :  { %v382_v39 = vmax.f32 %v365_v37, 0.0 }
 0x1cb   :  { %v593_v40 = vpack.c.bf16 %v382_v39, %v381_v38 }
 0x1cd   :  { %601 = vst [vmem:[#allocation8 + $0x38] sm:$0xff] %v593_v40  }
 0x1ce   :  { %427 = dma.vmem_to_hbm [thread:$0]  %s420_s5, 1024, %s422_s8, [#allocation4], %s728_s23, %s728_s23, %s729_s24  }
 0x1cf   :  { %725 = dma.done.wait [#allocation4], 1024  }
 0x1d0   :  { %726 = vsyncadd [#allocation4], 4294966272 }
 0x1d1   :  { %432 = vsyncpa [#allocation3], 1 }
 0x1d2   :  { %433 = vsyncpa [#allocation6], 1 }
 0x1d3   :  { %434 = vsyncpa [#allocation4], 1 }

</bundles_post_ra>
